<compile_context>
chip_gen: v5e
topology: v5e:2x2
jax: 0.10.0
libtpu: 0.0.40
codegen_flags: <defaults>
</compile_context>

<pallas_src>
import functools

import jax
import jax.numpy as jnp
from jax.experimental import pallas as pl
from jax.experimental.pallas import tpu as pltpu


# ----------------------------------------------------------------------------
# helpers
# ----------------------------------------------------------------------------
def _round_up(n, m):
    return ((n + m - 1) // m) * m


def _pad_to(x, shape):
    pads = [(0, s - d) for d, s in zip(x.shape, shape)]
    if all(p == (0, 0) for p in pads):
        return x
    return jnp.pad(x, pads)


# ----------------------------------------------------------------------------
# Fused Pallas kernel: full decoder forward for one batch tile.
#   refs = (x_ref, w0_ref, b0_ref, w1_ref, b1_ref, ..., o_ref)
# ----------------------------------------------------------------------------
def _decoder_kernel(*refs, num_layers, f_out):
    x_ref = refs[0]
    o_ref = refs[-1]

    h = x_ref[...].astype(jnp.float32)
    for l in range(num_layers):
        w = refs[1 + 2 * l][...]
        b = refs[2 + 2 * l][...].astype(jnp.float32)     # (1, out_pad) broadcasts
        lhs = h if w.dtype == jnp.float32 else h.astype(w.dtype)
        h = jnp.dot(lhs, w, preferred_element_type=jnp.float32) + b
        if l < num_layers - 1:
            h = jnp.maximum(h, 0.0)                       # ReLU on hidden layers

    # Output activation — exp/tanh issue on the EUP slot (free under the MXU).
    if f_out == "sigmoid":
        h = jax.nn.sigmoid(h)
    else:  # "tanh"
        h = jnp.tanh(h)

    o_ref[...] = h.astype(o_ref.dtype)


# ----------------------------------------------------------------------------
# Parameter construction (matches the PyTorch Decoder's layer structure)
# ----------------------------------------------------------------------------
def init_decoder_params(key, latent_dim, hidden_dims, output_dim,
                        param_dtype=jnp.float32):
    """Hidden stack: Linear(latent_dim -> hidden_dims[-1]) ... Linear(-> hidden_dims[0])
    Output head : Linear(hidden_dims[0] -> output_dim)
    Weights stored as (in_dim, out_dim); init mimics PyTorch's
    U(-1/sqrt(in_dim), 1/sqrt(in_dim)).

    param_dtype=jnp.bfloat16 is recommended on v6e/v7x (halves weight DMA and
    doubles MXU rate; accumulation in the kernel stays f32).
    """
    params = []
    in_dim = latent_dim
    dims = list(reversed(hidden_dims)) + [output_dim]
    for out_dim in dims:
        key, kw, kb = jax.random.split(key, 3)
        bound = 1.0 / (in_dim ** 0.5)
        w = jax.random.uniform(kw, (in_dim, out_dim), jnp.float32, -bound, bound)
        b = jax.random.uniform(kb, (1, out_dim), jnp.float32, -bound, bound)
        params.append((w.astype(param_dtype), b.astype(param_dtype)))
        in_dim = out_dim
    return params


def pad_decoder_params(params):
    """Zero-pad every weight/bias to lane-dense (multiples of 128) shapes.
    Call ONCE (outside jit); the padded params are reused for every forward.
    Zero padding is exact: padded input cols are 0, padded weight rows/cols
    and biases are 0, ReLU(0)=0, and padded output cols are sliced off.
    """
    padded = []
    cur_in = _round_up(params[0][0].shape[0], 128)
    for (w, b) in params:
        o_pad = _round_up(w.shape[1], 128)
        padded.append((_pad_to(w, (cur_in, o_pad)), _pad_to(b, (1, o_pad))))
        cur_in = o_pad
    return padded


# ----------------------------------------------------------------------------
# Fused forward pass (single pallas_call, batch-tiled grid)
# ----------------------------------------------------------------------------
def decoder_forward(padded_params, z, *, out_dim, f_out, tile_b=256):
    if f_out not in ("sigmoid", "tanh"):
        raise ValueError("The output activation must be either 'sigmoid' or 'tanh'")

    B, latent_dim = z.shape
    in_pad = padded_params[0][0].shape[0]
    out_pad = padded_params[-1][0].shape[1]
    assert latent_dim <= in_pad and out_dim <= out_pad

    # Batch tile: multiple of 8 (f32 sublanes); small batches use one tile.
    tile = max(8, min(_round_up(tile_b, 8), _round_up(B, 8)))
    b_pad = _round_up(B, tile)
    n_tiles = b_pad // tile

    z_p = _pad_to(z, (b_pad, in_pad))

    flat_inputs = [z_p]
    in_specs = [pl.BlockSpec((tile, in_pad), lambda i: (i, 0))]
    for (w_p, b_p) in padded_params:
        flat_inputs.extend((w_p, b_p))
        # Constant index_map -> weights/biases DMA'd once, stay VMEM-resident.
        in_specs.append(pl.BlockSpec(w_p.shape, lambda i: (0, 0)))
        in_specs.append(pl.BlockSpec(b_p.shape, lambda i: (0, 0)))

    out_specs = pl.BlockSpec((tile, out_pad), lambda i: (i, 0))

    # --- VMEM budget (resident weights + 2x double-buffered io tiles + live h)
    w_bytes = sum(int(w.size) * w.dtype.itemsize + int(b.size) * b.dtype.itemsize
                  for (w, b) in padded_params)
    max_dim = max([in_pad] + [w.shape[1] for (w, _) in padded_params])
    io_bytes = 2 * tile * in_pad * 4 + 2 * tile * out_pad * 4
    act_bytes = 2 * tile * max_dim * 4
    vmem_budget = int((w_bytes + io_bytes + act_bytes) * 1.25) + (1 << 20)
    vmem_budget = max(min(vmem_budget, 64 << 20), 4 << 20)   # safe on v7x's 64 MiB

    # --- Cost estimate so XLA schedules producers/consumers around this call.
    flops = 2 * b_pad * sum(w.shape[0] * w.shape[1] for (w, _) in padded_params)
    bytes_accessed = (w_bytes
                      + b_pad * in_pad * z.dtype.itemsize
                      + b_pad * out_pad * z.dtype.itemsize)
    cost = pl.CostEstimate(flops=flops,
                           transcendentals=b_pad * out_pad,
                           bytes_accessed=bytes_accessed)

    kernel = functools.partial(_decoder_kernel,
                               num_layers=len(padded_params), f_out=f_out)

    out_p = pl.pallas_call(
        kernel,
        out_shape=jax.ShapeDtypeStruct((b_pad, out_pad), z.dtype),
        grid=(n_tiles,),
        in_specs=in_specs,
        out_specs=out_specs,
        compiler_params=pltpu.CompilerParams(
            dimension_semantics=("parallel",),     # v7x: shard tiles across 2 TCs
            vmem_limit_bytes=vmem_budget),
        cost_estimate=cost,
    )(*flat_inputs)

    return out_p[:B, :out_dim]


# ----------------------------------------------------------------------------
# Pure-JAX reference for a correctness sanity check
# ----------------------------------------------------------------------------
def decoder_forward_ref(params, z, f_out):
    h = z
    for (w, b) in params[:-1]:
        h = jnp.maximum(h @ w.astype(jnp.float32) + b.astype(jnp.float32), 0.0)
    w_out, b_out = params[-1]
    y = h @ w_out.astype(jnp.float32) + b_out.astype(jnp.float32)
    return jax.nn.sigmoid(y) if f_out == "sigmoid" else jnp.tanh(y)


if __name__ == "__main__":
    # Small shapes consistent with the module's forward:
    #   z: (batch, latent_dim) -> x_hat: (batch, output_dim)
    batch = 2
    latent_dim = 8
    hidden_dims = [32, 16]     # decoder walks them reversed: 16 -> 32
    output_dim = 64
    f_out = "sigmoid"

    key = jax.random.PRNGKey(0)
    key, kz = jax.random.split(key)
    z = jax.random.normal(kz, (batch, latent_dim), jnp.float32)

    # f32 params keep bit-faithful semantics w.r.t. the PyTorch module;
    # pass param_dtype=jnp.bfloat16 on v6e/v7x for 2x MXU / half the DMA.
    params = init_decoder_params(key, latent_dim, hidden_dims, output_dim)

    # Pad ONCE, outside the jitted forward (perf-review item #1).
    padded_params = pad_decoder_params(params)

    fwd = jax.jit(functools.partial(decoder_forward,
                                    out_dim=output_dim, f_out=f_out))
    x_hat = fwd(padded_params, z)
    x_hat = jax.block_until_ready(x_hat)

    # sanity check vs. plain-JAX reference
    x_ref = decoder_forward_ref(params, z, f_out)
    assert x_hat.shape == (batch, output_dim)
    assert jnp.allclose(x_hat, x_ref, atol=1e-5, rtol=1e-5)

    print("KERNEL_OK")
</pallas_src>

<mosaic_0001>
module attributes {stable_mosaic.version = 11 : i64} {
  func.func @_decoder_kernel(%arg0: i32, %arg1: memref<8x128xf32, #tpu.memory_space<vmem>>, %arg2: memref<128x128xf32, #tpu.memory_space<vmem>>, %arg3: memref<1x128xf32, #tpu.memory_space<vmem>>, %arg4: memref<128x128xf32, #tpu.memory_space<vmem>>, %arg5: memref<1x128xf32, #tpu.memory_space<vmem>>, %arg6: memref<128x128xf32, #tpu.memory_space<vmem>>, %arg7: memref<1x128xf32, #tpu.memory_space<vmem>>, %arg8: memref<8x128xf32, #tpu.memory_space<vmem>>) attributes {dimension_semantics = [#tpu.dimension_semantics<parallel>], iteration_bounds = array<i64: 1>, scalar_prefetch = 0 : i64, scratch_operands = 0 : i64, tpu.core_type = #tpu.core_type<tc>, window_params = [{transform_indices = @transform_0, window_bounds = array<i64: 8, 128>}, {pipeline_mode = #tpu.pipeline_mode<synchronous>, transform_indices = @transform_1, window_bounds = array<i64: 128, 128>}, {pipeline_mode = #tpu.pipeline_mode<synchronous>, transform_indices = @transform_2, window_bounds = array<i64: 1, 128>}, {pipeline_mode = #tpu.pipeline_mode<synchronous>, transform_indices = @transform_3, window_bounds = array<i64: 128, 128>}, {pipeline_mode = #tpu.pipeline_mode<synchronous>, transform_indices = @transform_4, window_bounds = array<i64: 1, 128>}, {pipeline_mode = #tpu.pipeline_mode<synchronous>, transform_indices = @transform_5, window_bounds = array<i64: 128, 128>}, {pipeline_mode = #tpu.pipeline_mode<synchronous>, transform_indices = @transform_6, window_bounds = array<i64: 1, 128>}, {transform_indices = @transform_7, window_bounds = array<i64: 8, 128>}]} {
    %c0 = arith.constant 0 : index
    %c0_0 = arith.constant 0 : index
    %0 = vector.load %arg1[%c0, %c0_0] : memref<8x128xf32, #tpu.memory_space<vmem>>, vector<8x128xf32>
    %c0_1 = arith.constant 0 : index
    %c0_2 = arith.constant 0 : index
    %1 = vector.load %arg2[%c0_1, %c0_2] : memref<128x128xf32, #tpu.memory_space<vmem>>, vector<128x128xf32>
    %c0_3 = arith.constant 0 : index
    %c0_4 = arith.constant 0 : index
    %2 = vector.load %arg3[%c0_3, %c0_4] : memref<1x128xf32, #tpu.memory_space<vmem>>, vector<1x128xf32>
    %cst = arith.constant dense<0.000000e+00> : vector<8x128xf32>
    %3 = tpu.matmul %0, %1, %cst {dimension_numbers = #tpu.dot_dimension_numbers<[1], [0], [0], [1], [0, 0, 1, 1], [], []>} : vector<8x128xf32>, vector<128x128xf32>, vector<8x128xf32> -> vector<8x128xf32>
    %4 = vector.broadcast %2 : vector<1x128xf32> to vector<8x128xf32>
    %5 = arith.addf %3, %4 : vector<8x128xf32>
    %cst_5 = arith.constant 0.000000e+00 : f32
    %6 = vector.broadcast %cst_5 : f32 to vector<8x128xf32>
    %7 = arith.maximumf %5, %6 : vector<8x128xf32>
    %c0_6 = arith.constant 0 : index
    %c0_7 = arith.constant 0 : index
    %8 = vector.load %arg4[%c0_6, %c0_7] : memref<128x128xf32, #tpu.memory_space<vmem>>, vector<128x128xf32>
    %c0_8 = arith.constant 0 : index
    %c0_9 = arith.constant 0 : index
    %9 = vector.load %arg5[%c0_8, %c0_9] : memref<1x128xf32, #tpu.memory_space<vmem>>, vector<1x128xf32>
    %cst_10 = arith.constant dense<0.000000e+00> : vector<8x128xf32>
    %10 = tpu.matmul %7, %8, %cst_10 {dimension_numbers = #tpu.dot_dimension_numbers<[1], [0], [0], [1], [0, 0, 1, 1], [], []>} : vector<8x128xf32>, vector<128x128xf32>, vector<8x128xf32> -> vector<8x128xf32>
    %11 = vector.broadcast %9 : vector<1x128xf32> to vector<8x128xf32>
    %12 = arith.addf %10, %11 : vector<8x128xf32>
    %cst_11 = arith.constant 0.000000e+00 : f32
    %13 = vector.broadcast %cst_11 : f32 to vector<8x128xf32>
    %14 = arith.maximumf %12, %13 : vector<8x128xf32>
    %c0_12 = arith.constant 0 : index
    %c0_13 = arith.constant 0 : index
    %15 = vector.load %arg6[%c0_12, %c0_13] : memref<128x128xf32, #tpu.memory_space<vmem>>, vector<128x128xf32>
    %c0_14 = arith.constant 0 : index
    %c0_15 = arith.constant 0 : index
    %16 = vector.load %arg7[%c0_14, %c0_15] : memref<1x128xf32, #tpu.memory_space<vmem>>, vector<1x128xf32>
    %cst_16 = arith.constant dense<0.000000e+00> : vector<8x128xf32>
    %17 = tpu.matmul %14, %15, %cst_16 {dimension_numbers = #tpu.dot_dimension_numbers<[1], [0], [0], [1], [0, 0, 1, 1], [], []>} : vector<8x128xf32>, vector<128x128xf32>, vector<8x128xf32> -> vector<8x128xf32>
    %18 = vector.broadcast %16 : vector<1x128xf32> to vector<8x128xf32>
    %19 = arith.addf %17, %18 : vector<8x128xf32>
    %20 = arith.negf %19 : vector<8x128xf32>
    %21 = math.exp %20 : vector<8x128xf32>
    %cst_17 = arith.constant 1.000000e+00 : f32
    %22 = vector.broadcast %cst_17 : f32 to vector<8x128xf32>
    %23 = arith.addf %22, %21 : vector<8x128xf32>
    %24 = arith.divf %22, %23 : vector<8x128xf32>
    %c0_18 = arith.constant 0 : index
    %c0_19 = arith.constant 0 : index
    %25 = vector.load %arg8[%c0_18, %c0_19] : memref<8x128xf32, #tpu.memory_space<vmem>>, vector<8x128xf32>
    tpu.vector_store %arg8[%c0_18, %c0_19], %24 {strides = array<i32>} : memref<8x128xf32, #tpu.memory_space<vmem>>, vector<8x128xf32>,
    return
  }
  func.func @transform_0(%arg0: i32) -> (i32, i32) {
    %c0_i32 = arith.constant 0 : i32
    %c0_i32_0 = arith.constant 0 : i32
    return %arg0, %c0_i32 : i32, i32
  }
  func.func @transform_1(%arg0: i32) -> (i32, i32) {
    %c0_i32 = arith.constant 0 : i32
    %c0_i32_0 = arith.constant 0 : i32
    %c0_i32_1 = arith.constant 0 : i32
    return %c0_i32, %c0_i32_0 : i32, i32
  }
  func.func @transform_2(%arg0: i32) -> (i32, i32) {
    %c0_i32 = arith.constant 0 : i32
    %c0_i32_0 = arith.constant 0 : i32
    %c0_i32_1 = arith.constant 0 : i32
    return %c0_i32, %c0_i32_0 : i32, i32
  }
  func.func @transform_3(%arg0: i32) -> (i32, i32) {
    %c0_i32 = arith.constant 0 : i32
    %c0_i32_0 = arith.constant 0 : i32
    %c0_i32_1 = arith.constant 0 : i32
    return %c0_i32, %c0_i32_0 : i32, i32
  }
  func.func @transform_4(%arg0: i32) -> (i32, i32) {
    %c0_i32 = arith.constant 0 : i32
    %c0_i32_0 = arith.constant 0 : i32
    %c0_i32_1 = arith.constant 0 : i32
    return %c0_i32, %c0_i32_0 : i32, i32
  }
  func.func @transform_5(%arg0: i32) -> (i32, i32) {
    %c0_i32 = arith.constant 0 : i32
    %c0_i32_0 = arith.constant 0 : i32
    %c0_i32_1 = arith.constant 0 : i32
    return %c0_i32, %c0_i32_0 : i32, i32
  }
  func.func @transform_6(%arg0: i32) -> (i32, i32) {
    %c0_i32 = arith.constant 0 : i32
    %c0_i32_0 = arith.constant 0 : i32
    %c0_i32_1 = arith.constant 0 : i32
    return %c0_i32, %c0_i32_0 : i32, i32
  }
  func.func @transform_7(%arg0: i32) -> (i32, i32) {
    %c0_i32 = arith.constant 0 : i32
    %c0_i32_0 = arith.constant 0 : i32
    return %arg0, %c0_i32 : i32, i32
  }
}

</mosaic_0001>

<bundles_post_ra>
// kernel: decoder_forward.1
= control target key start
LH: loop header
LB: loop body
LE: loop exit
PB: predicated region body
PF: predicated region fallthrough
CT: control target
= control target key end

     0   :  { %12 = vsyncpa [#allocation3], 0  ;;  %s380_s0 = inlined_call_operand.vmem [shape: f32[8,128], index: 0, kind: input, shape index: {}]   ;;  %s381_s1 = inlined_call_operand.hbm [shape: f32[128,128], index: 1, kind: input, shape index: {}]   ;;  %s382_s2 = inlined_call_operand.vmem [shape: f32[1,128], index: 2, kind: input, shape index: {}]   ;;  %s383_s3 = inlined_call_operand.hbm [shape: f32[128,128], index: 3, kind: input, shape index: {}]   ;;  %s384_s4 = inlined_call_operand.vmem [shape: f32[1,128], index: 4, kind: input, shape index: {}]   ;;  %s385_s5 = inlined_call_operand.hbm [shape: f32[128,128], index: 5, kind: input, shape index: {}]   ;;  %s386_s6 = inlined_call_operand.vmem [shape: f32[1,128], index: 6, kind: input, shape index: {}]   ;;  %s387_s7 = inlined_call_operand.vmem [shape: f32[8,128], index: 7, kind: output, shape index: {}]  }
   0x1   :  { %13 = vsyncpa [#allocation5], 0  ;;  %s35_s26 = sshll.u32 %s383_s3, 4  ;;  %s311_s27 = smov [#allocation4]   ;;  %s36_s26 = int_to_ptr.hbm [resolvable:$true] %s35_s26 }
   0x2   :  { %s37_s28 = sshll.u32 %s311_s27, 4  ;;  %s20_s8 = sshll.u32 %s381_s1, 4  ;;  %s38_s28 = int_to_ptr.vmem [resolvable:$true] %s37_s28  ;;  %s21_s8 = int_to_ptr.hbm [resolvable:$true] %s20_s8 }
   0x3   :  { %s312_s9 = smov 128   ;;  %s313_s10 = smov 8  }
   0x4   :  { %43 = dma.hbm_to_vmem [thread:$0]  %s36_s26, 2048, %s38_s28, [#allocation5], %s312_s9, %s312_s9, %s313_s10  }
   0x5   :  { %s314_s11 = smov [#allocation2]   ;;  %s50_s15 = sshll.u32 %s385_s5, 4  ;;  %s51_s15 = int_to_ptr.hbm [resolvable:$true] %s50_s15 }
   0x6   :  { %s22_s12 = sshll.u32 %s314_s11, 4  ;;  %s315_s3 = smov [#allocation6]   ;;  %s23_s12 = int_to_ptr.vmem [resolvable:$true] %s22_s12 }
   0x7   :  { %28 = dma.hbm_to_vmem [thread:$0]  %s21_s8, 2048, %s23_s12, [#allocation3], %s312_s9, %s312_s9, %s313_s10  }
   0x8   :  { %s52_s16 = sshll.u32 %s315_s3, 4  ;;  %s53_s16 = int_to_ptr.vmem [resolvable:$true] %s52_s16 }
   0x9   :  { %58 = dma.hbm_to_vmem [thread:$0]  %s51_s15, 2048, %s53_s16, [#allocation5], %s312_s9, %s312_s9, %s313_s10  }
   0xa   :  { %307 = dma.done.wait [#allocation3], 2048  }
   0xb   :  { %308 = vsyncadd [#allocation3], 4294965248 }
   0xc   :  { %309 = dma.done.wait [#allocation5], 4096  }
   0xd   :  { %310 = vsyncadd [#allocation5], 4294963200  ;;  %v89_v0 = vld [vmem:[#allocation2 + $0x78] sm:$0xff]  ;;  %v88_v1 = vld [vmem:[#allocation2 + $0x70] sm:$0xff] }
   0xe   :  { %94 = vmatpush.msra.mxu0 %v89_v0  ;;  %v87_v2 = vld [vmem:[#allocation2 + $0x68] sm:$0xff]  ;;  %v86_v3 = vld [vmem:[#allocation2 + $0x60] sm:$0xff]  ;;  %v130_v4 = vld [vmem:[#allocation4 + $0x78] sm:$0xff] }
   0xf   :  { %v85_v5 = vld [vmem:[#allocation2 + $0x58] sm:$0xff]  ;;  %135 = vmatpush.msra.mxu1 %v130_v4  ;;  %v129_v6 = vld [vmem:[#allocation4 + $0x70] sm:$0xff]  ;;  %v128_v7 = vld [vmem:[#allocation4 + $0x68] sm:$0xff] }
  0x10   :  { %95 = vmatpush.msra.mxu0 %v88_v1  ;;  %v84_v8 = vld [vmem:[#allocation2 + $0x50] sm:$0xff]  ;;  %v127_v9 = vld [vmem:[#allocation4 + $0x60] sm:$0xff]  ;;  %v83_v10 = vld [vmem:[#allocation2 + $0x48] sm:$0xff] }
  0x11   :  { %136 = vmatpush.msra.mxu1 %v129_v6  ;;  %v126_v11 = vld [vmem:[#allocation4 + $0x58] sm:$0xff]  ;;  %v82_v12 = vld [vmem:[#allocation2 + $0x40] sm:$0xff]  ;;  %v125_v13 = vld [vmem:[#allocation4 + $0x50] sm:$0xff] }
  0x12   :  { %96 = vmatpush.msra.mxu0 %v87_v2  ;;  %v81_v14 = vld [vmem:[#allocation2 + $0x38] sm:$0xff]  ;;  %v124_v15 = vld [vmem:[#allocation4 + $0x48] sm:$0xff]  ;;  %v80_v16 = vld [vmem:[#allocation2 + $0x30] sm:$0xff] }
  0x13   :  { %137 = vmatpush.msra.mxu1 %v128_v7  ;;  %v123_v17 = vld [vmem:[#allocation4 + $0x40] sm:$0xff]  ;;  %v79_v18 = vld [vmem:[#allocation2 + $0x28] sm:$0xff]  ;;  %v122_v19 = vld [vmem:[#allocation4 + $0x38] sm:$0xff] }
  0x14   :  { %97 = vmatpush.msra.mxu0 %v86_v3  ;;  %v78_v20 = vld [vmem:[#allocation2 + $0x20] sm:$0xff]  ;;  %v121_v21 = vld [vmem:[#allocation4 + $0x30] sm:$0xff]  ;;  %v77_v22 = vld [vmem:[#allocation2 + $0x18] sm:$0xff] }
  0x15   :  { %138 = vmatpush.msra.mxu1 %v127_v9  ;;  %v120_v23 = vld [vmem:[#allocation4 + $0x28] sm:$0xff]  ;;  %v76_v24 = vld [vmem:[#allocation2 + $0x10] sm:$0xff]  ;;  %v119_v25 = vld [vmem:[#allocation4 + $0x20] sm:$0xff] }
  0x16   :  { %98 = vmatpush.msra.mxu0 %v85_v5  ;;  %v75_v26 = vld [vmem:[#allocation2 + $0x8] sm:$0xff]  ;;  %v118_v27 = vld [vmem:[#allocation4 + $0x18] sm:$0xff]  ;;  %v74_v28 = vld [vmem:[#allocation2] sm:$0xff] }
  0x17   :  { %139 = vmatpush.msra.mxu1 %v126_v11  ;;  %v73_v29 = vld [vmem:[%s380_s0] sm:$0xff]  ;;  %v117_v30 = vld [vmem:[#allocation4 + $0x10] sm:$0xff]  ;;  %v116_v31 = vld [vmem:[#allocation4 + $0x8] sm:$0xff] }
  0x18   :  { %99 = vmatpush.msra.mxu0 %v84_v8  ;;  %v115_v32 = vld [vmem:[#allocation4] sm:$0xff]  ;;  %v171_v33 = vld [vmem:[#allocation6 + $0x78] sm:$0xff]  ;;  %v170_v34 = vld [vmem:[#allocation6 + $0x70] sm:$0xff] }
  0x19   :  { %140 = vmatpush.msra.mxu1 %v125_v13  ;;  %176 = vmatpush.msra.mxu2 %v171_v33  ;;  %v169_v35 = vld [vmem:[#allocation6 + $0x68] sm:$0xff]  ;;  %v168_v36 = vld [vmem:[#allocation6 + $0x60] sm:$0xff]  ;;  %v167_v37 = vld [vmem:[#allocation6 + $0x58] sm:$0xff] }
  0x1a   :  { %100 = vmatpush.msra.mxu0 %v83_v10  ;;  %v166_v38 = vld [vmem:[#allocation6 + $0x50] sm:$0xff]  ;;  %v165_v39 = vld [vmem:[#allocation6 + $0x48] sm:$0xff]  ;;  %v164_v40 = vld [vmem:[#allocation6 + $0x40] sm:$0xff] }
  0x1b   :  { %141 = vmatpush.msra.mxu1 %v124_v15  ;;  %177 = vmatpush.msra.mxu2 %v170_v34  ;;  %v163_v41 = vld [vmem:[#allocation6 + $0x38] sm:$0xff]  ;;  %v162_v42 = vld [vmem:[#allocation6 + $0x30] sm:$0xff]  ;;  %v161_v43 = vld [vmem:[#allocation6 + $0x28] sm:$0xff] }
  0x1c   :  { %101 = vmatpush.msra.mxu0 %v82_v12  ;;  %v160_v44 = vld [vmem:[#allocation6 + $0x20] sm:$0xff]  ;;  %v159_v45 = vld [vmem:[#allocation6 + $0x18] sm:$0xff]  ;;  %v158_v50 = vld [vmem:[#allocation6 + $0x10] sm:$0xff] }
  0x1d   :  { %142 = vmatpush.msra.mxu1 %v123_v17  ;;  %178 = vmatpush.msra.mxu2 %v169_v35  ;;  %v228_v46 = vld [vmem:[%s382_s2] ss:$0 sm:$0xff]  ;;  %v157_v51 = vld [vmem:[#allocation6 + $0x8] sm:$0xff] }
  0x1e   :  { %102 = vmatpush.msra.mxu0 %v81_v14  ;;  %v156_v52 = vld [vmem:[#allocation6] sm:$0xff] }
  0x1f   :  { %143 = vmatpush.msra.mxu1 %v122_v19  ;;  %179 = vmatpush.msra.mxu2 %v168_v36  ;;  %v229_v53 = vld [vmem:[%s384_s4] ss:$0 sm:$0xff] }
  0x20   :  { %103 = vmatpush.msra.mxu0 %v80_v16  ;;  %v230_v57 = vld [vmem:[%s386_s6] ss:$0 sm:$0xff] }
  0x21   :  { %144 = vmatpush.msra.mxu1 %v121_v21  ;;  %180 = vmatpush.msra.mxu2 %v167_v37 }
  0x22   :  { %104 = vmatpush.msra.mxu0 %v79_v18 }
  0x23   :  { %145 = vmatpush.msra.mxu1 %v120_v23  ;;  %181 = vmatpush.msra.mxu2 %v166_v38 }
  0x24   :  { %105 = vmatpush.msra.mxu0 %v78_v20 }
  0x25   :  { %146 = vmatpush.msra.mxu1 %v119_v25  ;;  %182 = vmatpush.msra.mxu2 %v165_v39 }
  0x26   :  { %106 = vmatpush.msra.mxu0 %v77_v22 }
  0x27   :  { %147 = vmatpush.msra.mxu1 %v118_v27  ;;  %183 = vmatpush.msra.mxu2 %v164_v40 }
  0x28   :  { %107 = vmatpush.msra.mxu0 %v76_v24 }
  0x29   :  { %148 = vmatpush.msra.mxu1 %v117_v30  ;;  %184 = vmatpush.msra.mxu2 %v163_v41 }
  0x2a   :  { %108 = vmatpush.msra.mxu0 %v75_v26 }
  0x2b   :  { %149 = vmatpush.msra.mxu1 %v116_v31  ;;  %185 = vmatpush.msra.mxu2 %v162_v42 }
  0x2c   :  { %109 = vmatpush.msra.mxu0 %v74_v28 }
  0x2d   :  { %110 = vmatmul.f32.vlgmr.msra.gmra.mxu0 %v73_v29  ;;  %150 = vmatpush.msra.mxu1 %v115_v32 }
  0x2e   :  { %186 = vmatpush.msra.mxu2 %v161_v43 }
  0x30   :  { %187 = vmatpush.msra.mxu2 %v160_v44 }
  0x32   :  { %188 = vmatpush.msra.mxu2 %v159_v45 }
  0x34   :  { %189 = vmatpush.msra.mxu2 %v158_v50 }
  0x36   :  { %190 = vmatpush.msra.mxu2 %v157_v51 }
  0x38   :  { %191 = vmatpush.msra.mxu2 %v156_v52 }
  0xaa   :  { %v111_v47 = vpop.f32.mrf.mxu0 }
  0xab   :  { %v112_v48 = vadd.f32 %v228_v46, %v111_v47 }
  0xad   :  { %v114_v49 = vmax.f32 %v112_v48, 0.0 }
  0xaf   :  { %151 = vmatmul.f32.vlgmr.msra.gmra.mxu1 %v114_v49 }
 0x12c   :  { %v152_v54 = vpop.f32.mrf.mxu1 }
 0x12d   :  { %v153_v55 = vadd.f32 %v229_v53, %v152_v54 }
 0x12f   :  { %v155_v56 = vmax.f32 %v153_v55, 0.0 }
 0x131   :  { %192 = vmatmul.f32.vlgmr.msra.gmra.mxu2 %v155_v56 }
 0x1b4   :  { %v193_v58 = vpop.f32.mrf.mxu2 }
 0x1b5   :  { %v194_v59 = vadd.f32 %v230_v57, %v193_v58 }
 0x1b7   :  { %v222_v60 = vmul.f32 -1.442695, %v194_v59 }
 0x1b9   :  { %231 = vpow2.f32 %v222_v60 }
 0x1bf   :  { %v232_v61 = vpop.eup %231 }
 0x1c0   :  { %v199_v62 = vadd.f32 1.0, %v232_v61 }
 0x1c2   :  { %233 = vrcp.f32 %v199_v62  ;;  %v211_v2 = vand.u32 2147483648, %v199_v62  ;;  %v209_v4 = vand.u32 2147483647, %v199_v62  ;;  %vm205_vm1 = vweird.f32 %v199_v62 }
 0x1c4   :  { %v212_v6 = vor.u32 1.1754944e-38, %v211_v2  ;;  %vm210_vm3 = vcmp.eq.f32.partialorder %v209_v4, 8.507059e+37 }
 0x1c8   :  { %v234_v63 = vpop.eup %233 }
 0x1c9   :  { %v201_v0 = vmul.f32 %v234_v63, %v199_v62  ;;  %vm206_vm0 = vweird.f32 %v234_v63 }
 0x1ca   :  { %vm207_vm2 = vmor %vm205_vm1, %vm206_vm0 }
 0x1cb   :  { %v202_v1 = vsub.f32 1.0, %v201_v0 }
 0x1cd   :  { %v203_v3 = vmul.f32 %v234_v63, %v202_v1 }
 0x1cf   :  { %v204_v5 = vadd.f32 %v234_v63, %v203_v3 }
 0x1d1   :  { %v208_v7 = vsel %vm207_vm2, %v234_v63, %v204_v5 }
 0x1d2   :  { %v213_v8 = vsel %vm210_vm3, %v212_v6, %v208_v7 }
 0x1d3   :  { %215 = vst [vmem:[%s387_s7] sm:$0xff] %v213_v8 }
 0x1d4   :  { %220 = vsyncpa [#allocation3], 1 }
 0x1d5   :  { %221 = vsyncpa [#allocation5], 1 }

</bundles_post_ra>
